<compile_context>
chip_gen: v7x
topology: tpu7x:2x2x1
jax: 0.10.0
libtpu: 0.0.40
codegen_flags: <defaults>
</compile_context>

<pallas_src>
import functools
import math

import jax
import jax.numpy as jnp
import numpy as np
from jax.experimental import pallas as pl
from jax.experimental.pallas import tpu as pltpu


# ----------------------------------------------------------------------------
# Config mirroring TrafficIA.__init__ (inference use)
# ----------------------------------------------------------------------------
class TrafficIAConfig:
    def __init__(self, input_mode="fpos", map_max_freq=200.0, yaw_min_freq=1.0,
                 yaw_max_freq=16.0, map_n_bands=0, yaw_n_bands=0,
                 n_extra_features=5, heading_encoding=True,
                 num_frequency_bands=32, class_onehot=False, random_mask=0.0):
        if any(n == 0 for n in (yaw_n_bands, map_n_bands)):
            # deprecated num_frequency_bands fallback, as in the torch module
            map_n_bands = num_frequency_bands
            yaw_n_bands = num_frequency_bands
        self.input_mode = input_mode.lower()
        assert self.input_mode in ("raw", "fpos", "fpos_extra")
        self.map_max_freq = map_max_freq
        self.yaw_min_freq = yaw_min_freq
        self.yaw_max_freq = yaw_max_freq
        self.map_n_bands = map_n_bands
        self.yaw_n_bands = yaw_n_bands
        self.n_extra_features = n_extra_features
        self.heading_encoding = heading_encoding
        self.class_onehot = class_onehot
        self.random_mask = random_mask
        # TODO(synk): ClassMode.SEPARATE (per-class pad-mask dict) and the
        # training-only apply_random_masking (data-dependent randperm) paths are
        # not implemented; they are boolean/host bookkeeping, not kernel work.

    @property
    def num_input_channels(self):
        if self.input_mode == "raw":
            return 8
        n = (self.map_n_bands * 2 + self.yaw_n_bands) * 2
        if self.input_mode == "fpos_extra":
            n += self.n_extra_features
        if self.class_onehot:
            n += 3
        if not self.heading_encoding:
            n += 1 - 2 * self.yaw_n_bands   # torch module's own bookkeeping quirk
        return n


# ----------------------------------------------------------------------------
# Host-side column table: one row per "ingredient", one column per output channel
#   rows 0..2 : pi*frequency scattered onto that column's source coordinate
#   row  3    : phase (pi/2 on cos columns, 0 elsewhere)  -> cos = sin(. + pi/2)
#   row  4    : class-id target on one-hot columns, never-true sentinel elsewhere
#   rows 5..  : one-hot routing of raw extra channels to their output columns
# ----------------------------------------------------------------------------
def _build_column_table(cfg, feat_dim):
    assert feat_dim >= 3, "need at least (x, y, yaw) channels"
    num_freq = [cfg.map_n_bands, cfg.map_n_bands]
    min_freq = [1.0, 1.0]
    max_freq = [cfg.map_max_freq, cfg.map_max_freq]
    if cfg.heading_encoding:
        num_freq.append(cfg.yaw_n_bands)
        min_freq.append(cfg.yaw_min_freq)
        max_freq.append(cfg.yaw_max_freq)

    freqs = [np.linspace(lo, hi / 2.0, n) for n, lo, hi in zip(num_freq, min_freq, max_freq)]
    sel_half = np.concatenate([np.full(n, i, np.int32) for i, n in enumerate(num_freq)])
    freq_half = np.concatenate(freqs)
    c_half = freq_half.size
    c_enc = 2 * c_half                       # [sin blocks per coord] ++ [cos blocks per coord]

    n_extra = cfg.n_extra_features if cfg.input_mode == "fpos_extra" else 0
    extra_start = 3 if cfg.heading_encoding else 2
    extra_src = tuple(range(extra_start, extra_start + n_extra))
    n_onehot = 3 if cfg.class_onehot else 0
    c_out = c_enc + n_extra + n_onehot

    tab = np.zeros((5 + n_extra, c_out), np.float32)
    for j in range(c_half):
        f = np.pi * freq_half[j]
        tab[sel_half[j], j] = f
        tab[sel_half[j], c_half + j] = f
    tab[3, c_half:c_enc] = np.pi / 2.0
    tab[4, :] = -1e30                         # never matches a real class id
    if n_onehot:
        tab[4, c_enc + n_extra:c_out] = np.arange(1, 4, dtype=np.float32)
    for k in range(n_extra):
        tab[5 + k, c_enc + k] = 1.0
    return jnp.asarray(tab), extra_src, c_out


def _pick_batch_tile(b, cap=8):
    bt = min(b, cap)
    while b % bt:
        bt -= 1
    return max(bt, 1)


# ----------------------------------------------------------------------------
# Pallas kernel: the whole tokenization, one lane-dense store per batch tile
# ----------------------------------------------------------------------------
def _traffic_ia_kernel(extra_src, x_ref, tab_ref, o_ref):
    # x_ref: (bt, N, F) raw features   tab_ref: (5+n_extra, C_out)   o_ref: (bt, N+1, C_out)
    n = x_ref.shape[1]
    f = x_ref.shape[2]

    o_ref[...] = jnp.zeros_like(o_ref)            # appended all-zero token (row N)

    x = x_ref[...].astype(jnp.float32)            # (bt, N, F)

    def row(r):                                   # (1, 1, C_out) broadcast row
        return tab_ref[r:r + 1, :][None, :, :]

    # Fourier argument: arg[.., j] = pi * freq_j * x[.., coord_j]
    arg = (x[..., 0:1] * row(0)
           + x[..., 1:2] * row(1)
           + x[..., 2:3] * row(2))
    # sin columns: phase 0; cos columns: phase pi/2; non-Fourier columns have
    # coef = 0 and phase = 0 so they contribute exactly sin(0) = 0.
    out = jnp.sin(arg + row(3))
    # Class one-hot columns (class labels are integer-valued floats, as in the data).
    out = out + (x[..., f - 1:f] == row(4)).astype(jnp.float32)
    # Extra passthrough features, routed to their columns by the one-hot rows 5...
    for k, src in enumerate(extra_src):
        out = out + x[..., src:src + 1] * row(5 + k)

    o_ref[:, :n, :] = out.astype(o_ref.dtype)


# ----------------------------------------------------------------------------
# Forward wrapper (matches TrafficIA.forward inference semantics)
# ----------------------------------------------------------------------------
def traffic_ia_forward(x, pad_mask, cfg):
    if cfg.input_mode == "raw":
        return x, pad_mask

    B, N, F = x.shape
    tab, extra_src, c_out = _build_column_table(cfg, F)
    bt = _pick_batch_tile(B)
    grid = (B // bt,)

    enc = pl.pallas_call(
        functools.partial(_traffic_ia_kernel, extra_src),
        out_shape=jax.ShapeDtypeStruct((B, N + 1, c_out), jnp.float32),
        grid=grid,
        in_specs=[pl.BlockSpec((bt, N, F), lambda i: (i, 0, 0)),
                  pl.BlockSpec(tab.shape, lambda i: (0, 0))],
        out_specs=pl.BlockSpec((bt, N + 1, c_out), lambda i: (i, 0, 0)),
        compiler_params=pltpu.CompilerParams(dimension_semantics=("parallel",)),
    )(x.astype(jnp.float32), tab)

    if pad_mask is not None:   # append "valid" column for the extra zero token
        pad_mask = jnp.concatenate([pad_mask, jnp.zeros_like(pad_mask[:, :1])], axis=1)
    return enc, pad_mask


# ----------------------------------------------------------------------------
# Pure-JAX reference mirroring the torch module (for the correctness check)
# ----------------------------------------------------------------------------
def traffic_ia_reference(x, pad_mask, cfg):
    if cfg.input_mode == "raw":
        return x, pad_mask
    num_freq = [cfg.map_n_bands, cfg.map_n_bands]
    min_freq = [1.0, 1.0]
    max_freq = [cfg.map_max_freq, cfg.map_max_freq]
    if cfg.heading_encoding:
        num_freq.append(cfg.yaw_n_bands)
        min_freq.append(cfg.yaw_min_freq)
        max_freq.append(cfg.yaw_max_freq)
    grids = []
    for i, (n, lo, hi) in enumerate(zip(num_freq, min_freq, max_freq)):
        freqs = jnp.linspace(lo, hi / 2.0, n)
        grids.append(x[..., i:i + 1] * freqs)
    enc = jnp.concatenate([jnp.sin(jnp.pi * g) for g in grids]
                          + [jnp.cos(jnp.pi * g) for g in grids], axis=-1)
    if cfg.input_mode == "fpos_extra":
        start = 3 if cfg.heading_encoding else 2
        enc = jnp.concatenate([enc, x[..., start:start + cfg.n_extra_features]], axis=-1)
    if cfg.class_onehot:
        idx = x[..., -1].astype(jnp.int32) + 1
        onehot = jax.nn.one_hot(idx, 6, dtype=enc.dtype)
        enc = jnp.concatenate([enc, onehot[..., 2:-1]], axis=-1)
    enc = jnp.concatenate([enc, jnp.zeros_like(enc[:, :1, :])], axis=1)
    if pad_mask is not None:
        pad_mask = jnp.concatenate([pad_mask, jnp.zeros_like(pad_mask[:, :1])], axis=1)
    return enc, pad_mask


if __name__ == "__main__":
    key = jax.random.PRNGKey(0)
    k_pos, k_yaw, k_ext, k_cls = jax.random.split(key, 4)

    B, N, F = 2, 8, 8   # batch, targets (seq), raw channels (RAW layout is 8-wide)
    cfg = TrafficIAConfig(
        input_mode="fpos_extra", map_max_freq=200.0, yaw_min_freq=1.0,
        yaw_max_freq=16.0, map_n_bands=32, yaw_n_bands=16, n_extra_features=5,
        heading_encoding=True, class_onehot=True)

    pos = jax.random.uniform(k_pos, (B, N, 2), minval=-1.0, maxval=1.0)
    yaw = jax.random.uniform(k_yaw, (B, N, 1), minval=-math.pi, maxval=math.pi)
    extras = jax.random.normal(k_ext, (B, N, F - 4), jnp.float32)
    cls = jax.random.randint(k_cls, (B, N, 1), 0, 4).astype(jnp.float32)
    x = jnp.concatenate([pos, yaw, extras, cls], axis=-1)          # (B, N, 8)
    pad_mask = jnp.zeros((B, N), dtype=bool).at[:, -1].set(True)   # last target padded

    fwd = jax.jit(lambda a, m: traffic_ia_forward(a, m, cfg))
    enc, mask_out = fwd(x, pad_mask)
    enc = jax.block_until_ready(enc)

    ref_enc, ref_mask = traffic_ia_reference(x, pad_mask, cfg)

    assert enc.shape == (B, N + 1, cfg.num_input_channels), enc.shape
    assert mask_out.shape == (B, N + 1), mask_out.shape
    assert bool(jnp.all(jnp.isfinite(enc)))
    assert bool(jnp.allclose(enc, ref_enc, rtol=5e-3, atol=5e-3))
    assert bool(jnp.array_equal(mask_out, ref_mask))
    print("KERNEL_OK")
</pallas_src>

<mosaic_0001>
module attributes {stable_mosaic.version = 11 : i64} {
  func.func @_traffic_ia_kernel(%arg0: i32, %arg1: memref<2x8x8xf32, #tpu.memory_space<vmem>>, %arg2: memref<10x168xf32, #tpu.memory_space<vmem>>, %arg3: memref<2x9x168xf32, #tpu.memory_space<vmem>>) attributes {dimension_semantics = [#tpu.dimension_semantics<parallel>], iteration_bounds = array<i64: 1>, scalar_prefetch = 0 : i64, scratch_operands = 0 : i64, tpu.core_type = #tpu.core_type<tc>, window_params = [{transform_indices = @transform_0, window_bounds = array<i64: 2, 8, 8>}, {pipeline_mode = #tpu.pipeline_mode<synchronous>, transform_indices = @transform_1, window_bounds = array<i64: 10, 168>}, {transform_indices = @transform_2, window_bounds = array<i64: 2, 9, 168>}]} {
    %cst = arith.constant 0.000000e+00 : f32
    %0 = vector.broadcast %cst : f32 to vector<2x9x168xf32>
    %c0 = arith.constant 0 : index
    %c0_0 = arith.constant 0 : index
    %c0_1 = arith.constant 0 : index
    %1 = vector.load %arg3[%c0, %c0_0, %c0_1] : memref<2x9x168xf32, #tpu.memory_space<vmem>>, vector<2x9x168xf32>
    tpu.vector_store %arg3[%c0, %c0_0, %c0_1], %0 {strides = array<i32>} : memref<2x9x168xf32, #tpu.memory_space<vmem>>, vector<2x9x168xf32>,
    %c0_2 = arith.constant 0 : index
    %c0_3 = arith.constant 0 : index
    %c0_4 = arith.constant 0 : index
    %2 = vector.load %arg1[%c0_2, %c0_3, %c0_4] : memref<2x8x8xf32, #tpu.memory_space<vmem>>, vector<2x8x8xf32>
    %3 = vector.extract_strided_slice %2 {offsets = [0, 0, 0], sizes = [2, 8, 1], strides = [1, 1, 1]} : vector<2x8x8xf32> to vector<2x8x1xf32>
    %c0_5 = arith.constant 0 : index
    %c0_6 = arith.constant 0 : index
    %4 = vector.load %arg2[%c0_5, %c0_6] : memref<10x168xf32, #tpu.memory_space<vmem>>, vector<1x168xf32>
    %5 = vector.shape_cast %4 : vector<1x168xf32> to vector<1x1x168xf32>
    %6 = vector.broadcast %3 : vector<2x8x1xf32> to vector<2x8x168xf32>
    %7 = vector.broadcast %5 : vector<1x1x168xf32> to vector<2x8x168xf32>
    %8 = arith.mulf %6, %7 : vector<2x8x168xf32>
    %9 = vector.extract_strided_slice %2 {offsets = [0, 0, 1], sizes = [2, 8, 1], strides = [1, 1, 1]} : vector<2x8x8xf32> to vector<2x8x1xf32>
    %c1 = arith.constant 1 : index
    %c0_7 = arith.constant 0 : index
    %10 = vector.load %arg2[%c1, %c0_7] : memref<10x168xf32, #tpu.memory_space<vmem>>, vector<1x168xf32>
    %11 = vector.shape_cast %10 : vector<1x168xf32> to vector<1x1x168xf32>
    %12 = vector.broadcast %9 : vector<2x8x1xf32> to vector<2x8x168xf32>
    %13 = vector.broadcast %11 : vector<1x1x168xf32> to vector<2x8x168xf32>
    %14 = arith.mulf %12, %13 : vector<2x8x168xf32>
    %15 = arith.addf %8, %14 : vector<2x8x168xf32>
    %16 = vector.extract_strided_slice %2 {offsets = [0, 0, 2], sizes = [2, 8, 1], strides = [1, 1, 1]} : vector<2x8x8xf32> to vector<2x8x1xf32>
    %c2 = arith.constant 2 : index
    %c0_8 = arith.constant 0 : index
    %17 = vector.load %arg2[%c2, %c0_8] : memref<10x168xf32, #tpu.memory_space<vmem>>, vector<1x168xf32>
    %18 = vector.shape_cast %17 : vector<1x168xf32> to vector<1x1x168xf32>
    %19 = vector.broadcast %16 : vector<2x8x1xf32> to vector<2x8x168xf32>
    %20 = vector.broadcast %18 : vector<1x1x168xf32> to vector<2x8x168xf32>
    %21 = arith.mulf %19, %20 : vector<2x8x168xf32>
    %22 = arith.addf %15, %21 : vector<2x8x168xf32>
    %c3 = arith.constant 3 : index
    %c0_9 = arith.constant 0 : index
    %23 = vector.load %arg2[%c3, %c0_9] : memref<10x168xf32, #tpu.memory_space<vmem>>, vector<1x168xf32>
    %24 = vector.shape_cast %23 : vector<1x168xf32> to vector<1x1x168xf32>
    %25 = vector.broadcast %24 : vector<1x1x168xf32> to vector<2x8x168xf32>
    %26 = arith.addf %22, %25 : vector<2x8x168xf32>
    %27 = math.sin %26 : vector<2x8x168xf32>
    %28 = vector.extract_strided_slice %2 {offsets = [0, 0, 7], sizes = [2, 8, 1], strides = [1, 1, 1]} : vector<2x8x8xf32> to vector<2x8x1xf32>
    %c4 = arith.constant 4 : index
    %c0_10 = arith.constant 0 : index
    %29 = vector.load %arg2[%c4, %c0_10] : memref<10x168xf32, #tpu.memory_space<vmem>>, vector<1x168xf32>
    %30 = vector.shape_cast %29 : vector<1x168xf32> to vector<1x1x168xf32>
    %31 = vector.broadcast %28 : vector<2x8x1xf32> to vector<2x8x168xf32>
    %32 = vector.broadcast %30 : vector<1x1x168xf32> to vector<2x8x168xf32>
    %33 = arith.cmpf oeq, %31, %32 : vector<2x8x168xf32>
    %34 = arith.extui %33 : vector<2x8x168xi1> to vector<2x8x168xi32>
    %35 = arith.sitofp %34 : vector<2x8x168xi32> to vector<2x8x168xf32>
    %36 = arith.addf %27, %35 : vector<2x8x168xf32>
    %37 = vector.extract_strided_slice %2 {offsets = [0, 0, 3], sizes = [2, 8, 1], strides = [1, 1, 1]} : vector<2x8x8xf32> to vector<2x8x1xf32>
    %c5 = arith.constant 5 : index
    %c0_11 = arith.constant 0 : index
    %38 = vector.load %arg2[%c5, %c0_11] : memref<10x168xf32, #tpu.memory_space<vmem>>, vector<1x168xf32>
    %39 = vector.shape_cast %38 : vector<1x168xf32> to vector<1x1x168xf32>
    %40 = vector.broadcast %37 : vector<2x8x1xf32> to vector<2x8x168xf32>
    %41 = vector.broadcast %39 : vector<1x1x168xf32> to vector<2x8x168xf32>
    %42 = arith.mulf %40, %41 : vector<2x8x168xf32>
    %43 = arith.addf %36, %42 : vector<2x8x168xf32>
    %44 = vector.extract_strided_slice %2 {offsets = [0, 0, 4], sizes = [2, 8, 1], strides = [1, 1, 1]} : vector<2x8x8xf32> to vector<2x8x1xf32>
    %c6 = arith.constant 6 : index
    %c0_12 = arith.constant 0 : index
    %45 = vector.load %arg2[%c6, %c0_12] : memref<10x168xf32, #tpu.memory_space<vmem>>, vector<1x168xf32>
    %46 = vector.shape_cast %45 : vector<1x168xf32> to vector<1x1x168xf32>
    %47 = vector.broadcast %44 : vector<2x8x1xf32> to vector<2x8x168xf32>
    %48 = vector.broadcast %46 : vector<1x1x168xf32> to vector<2x8x168xf32>
    %49 = arith.mulf %47, %48 : vector<2x8x168xf32>
    %50 = arith.addf %43, %49 : vector<2x8x168xf32>
    %51 = vector.extract_strided_slice %2 {offsets = [0, 0, 5], sizes = [2, 8, 1], strides = [1, 1, 1]} : vector<2x8x8xf32> to vector<2x8x1xf32>
    %c7 = arith.constant 7 : index
    %c0_13 = arith.constant 0 : index
    %52 = vector.load %arg2[%c7, %c0_13] : memref<10x168xf32, #tpu.memory_space<vmem>>, vector<1x168xf32>
    %53 = vector.shape_cast %52 : vector<1x168xf32> to vector<1x1x168xf32>
    %54 = vector.broadcast %51 : vector<2x8x1xf32> to vector<2x8x168xf32>
    %55 = vector.broadcast %53 : vector<1x1x168xf32> to vector<2x8x168xf32>
    %56 = arith.mulf %54, %55 : vector<2x8x168xf32>
    %57 = arith.addf %50, %56 : vector<2x8x168xf32>
    %58 = vector.extract_strided_slice %2 {offsets = [0, 0, 6], sizes = [2, 8, 1], strides = [1, 1, 1]} : vector<2x8x8xf32> to vector<2x8x1xf32>
    %c8 = arith.constant 8 : index
    %c0_14 = arith.constant 0 : index
    %59 = vector.load %arg2[%c8, %c0_14] : memref<10x168xf32, #tpu.memory_space<vmem>>, vector<1x168xf32>
    %60 = vector.shape_cast %59 : vector<1x168xf32> to vector<1x1x168xf32>
    %61 = vector.broadcast %58 : vector<2x8x1xf32> to vector<2x8x168xf32>
    %62 = vector.broadcast %60 : vector<1x1x168xf32> to vector<2x8x168xf32>
    %63 = arith.mulf %61, %62 : vector<2x8x168xf32>
    %64 = arith.addf %57, %63 : vector<2x8x168xf32>
    %65 = vector.extract_strided_slice %2 {offsets = [0, 0, 7], sizes = [2, 8, 1], strides = [1, 1, 1]} : vector<2x8x8xf32> to vector<2x8x1xf32>
    %c9 = arith.constant 9 : index
    %c0_15 = arith.constant 0 : index
    %66 = vector.load %arg2[%c9, %c0_15] : memref<10x168xf32, #tpu.memory_space<vmem>>, vector<1x168xf32>
    %67 = vector.shape_cast %66 : vector<1x168xf32> to vector<1x1x168xf32>
    %68 = vector.broadcast %65 : vector<2x8x1xf32> to vector<2x8x168xf32>
    %69 = vector.broadcast %67 : vector<1x1x168xf32> to vector<2x8x168xf32>
    %70 = arith.mulf %68, %69 : vector<2x8x168xf32>
    %71 = arith.addf %64, %70 : vector<2x8x168xf32>
    %c0_16 = arith.constant 0 : index
    %c0_17 = arith.constant 0 : index
    %c0_18 = arith.constant 0 : index
    %72 = vector.load %arg3[%c0_16, %c0_17, %c0_18] : memref<2x9x168xf32, #tpu.memory_space<vmem>>, vector<2x8x168xf32>
    tpu.vector_store %arg3[%c0_16, %c0_17, %c0_18], %71 {strides = array<i32>} : memref<2x9x168xf32, #tpu.memory_space<vmem>>, vector<2x8x168xf32>,
    return
  }
  func.func @transform_0(%arg0: i32) -> (i32, i32, i32) {
    %c0_i32 = arith.constant 0 : i32
    %c0_i32_0 = arith.constant 0 : i32
    %c0_i32_1 = arith.constant 0 : i32
    return %arg0, %c0_i32, %c0_i32_0 : i32, i32, i32
  }
  func.func @transform_1(%arg0: i32) -> (i32, i32) {
    %c0_i32 = arith.constant 0 : i32
    %c0_i32_0 = arith.constant 0 : i32
    %c0_i32_1 = arith.constant 0 : i32
    return %c0_i32, %c0_i32_0 : i32, i32
  }
  func.func @transform_2(%arg0: i32) -> (i32, i32, i32) {
    %c0_i32 = arith.constant 0 : i32
    %c0_i32_0 = arith.constant 0 : i32
    %c0_i32_1 = arith.constant 0 : i32
    return %arg0, %c0_i32, %c0_i32_0 : i32, i32, i32
  }
}

</mosaic_0001>

<bundles_post_ra>
// kernel: _lambda_.1
= control target key start
LH: loop header
LB: loop body
LE: loop exit
PB: predicated region body
PF: predicated region fallthrough
CT: control target
= control target key end

     0   :  { %7 = vsyncpa [#allocation3], 0  ;;  %s1433_s0 = inlined_call_operand.hbm [shape: f32[2,8,8], index: 0, kind: input, shape index: {}]   ;;  %s1434_s1 = inlined_call_operand.hbm [shape: f32[10,168], index: 1, kind: input, shape index: {}]   ;;  %s1435_s2 = inlined_call_operand.vmem [shape: f32[2,9,168], index: 2, kind: output, shape index: {}]  }
   0x1   :  { %8 = vsyncpa [#allocation5], 0  ;;  %s886_s9 = smov [#allocation2]   ;;  %s838_s13 = scalar_lea.hbm %s1433_s0, 256 }
   0x2   :  { %s14_s10 = sshll.u32 %s886_s9, 4  ;;  %p839_p0 = scmp.ne.s32.totalorder %s1433_s0, %s838_s13  ;;  %s15_s10 = int_to_ptr.vmem [resolvable:$true] %s14_s10 }
   0x3   :  { %p842_p1 = scmp.lt.u32.totalorder %s838_s13, %s1433_s0 }
   0x5   :  { %p844_p2 = pnand %p842_p1, %p839_p0 }
   0x7   :  { %847 = shalt.err (!%p844_p2)
}
   0x8   :  { %s848_s18 = scalar_lea.vmem %s15_s10, 256  ;;  %p853_p4 = scmp.lt.s32.totalorder %s15_s10, %s15_s10 }
   0x9   :  { %p849_p3 = scmp.ne.s32.totalorder %s15_s10, %s848_s18  ;;  %p854_p5 = scmp.lt.s32.totalorder %s848_s18, %s848_s18 }
   0xb   :  { %p855_p6 = por %p854_p5, %p853_p4 }
   0xd   :  { %p856_p7 = pnand %p855_p6, %p849_p3 }
   0xf   :  { %859 = shalt.err (!%p856_p7)
}
  0x10   :  { %s887_s19 = smov 128   ;;  %s888_s20 = smov 8  }
  0x11   :  { %20 = dma.hbm_to_vmem [thread:$0]  %s1433_s0, 256, %s15_s10, [#allocation3], %s887_s19, %s887_s19, %s888_s20  }
  0x12   :  { %s889_s23 = smov [#allocation4]   ;;  %s860_s27 = scalar_lea.hbm %s1434_s1, 512 }
  0x13   :  { %s26_s24 = sshll.u32 %s889_s23, 4  ;;  %p861_p8 = scmp.ne.s32.totalorder %s1434_s1, %s860_s27  ;;  %s27_s24 = int_to_ptr.vmem [resolvable:$true] %s26_s24 }
  0x14   :  { %p864_p9 = scmp.lt.u32.totalorder %s860_s27, %s1434_s1 }
  0x16   :  { %p866_p10 = pnand %p864_p9, %p861_p8 }
  0x18   :  { %869 = shalt.err (!%p866_p10)
}
  0x19   :  { %s870_s4 = scalar_lea.vmem %s27_s24, 512  ;;  %p875_p12 = scmp.lt.s32.totalorder %s27_s24, %s27_s24 }
  0x1a   :  { %p871_p11 = scmp.ne.s32.totalorder %s27_s24, %s870_s4  ;;  %p876_p13 = scmp.lt.s32.totalorder %s870_s4, %s870_s4 }
  0x1c   :  { %p877_p0 = por %p876_p13, %p875_p12 }
  0x1e   :  { %p878_p1 = pnand %p877_p0, %p871_p11 }
  0x20   :  { %881 = shalt.err (!%p878_p1)
}
  0x21   :  { %s890_s0 = smov 256   ;;  %s891_s5 = smov 16  }
  0x22   :  { %32 = dma.hbm_to_vmem [thread:$0]  %s1434_s1, 512, %s27_s24, [#allocation5], %s890_s0, %s890_s0, %s891_s5  }
  0x23   :  { %882 = dma.done.wait [#allocation3], 256  }
  0x24   :  { %883 = vsyncadd [#allocation3], 4294967040 }
  0x25   :  { %884 = dma.done.wait [#allocation5], 512  }
  0x26   :  { %885 = vsyncadd [#allocation5], 4294966784  ;;  %v892_v0 = vmov 1   ;;  %v893_v1 = vmov 0   ;;  %v49_v2 = vld [vmem:[#allocation2] sm:$0xff]  ;;  %v50_v3 = vld [vmem:[#allocation2 + $0x8] sm:$0xff]  ;;  %v63_v11 = vlaneseq }
  0x27   :  { %810 = vset.pattern.permute.xlu1 %v892_v0  ;;  %809 = vset.pattern.permute.xlu0 %v893_v1  ;;  %v894_v4 = vmov 2   ;;  %v895_v5 = vmov 7   ;;  %v896_v6 = vmov 3   ;;  %v897_v7 = vmov 4  }
  0x28   :  { %80 = vperm.xlu1 %810, %v49_v2   ;;  %54 = vperm.xlu0 %809, %v49_v2   ;;  %v898_v8 = vmov 5   ;;  %v899_v9 = vmov 6   ;;  %vm43_vm0 = vcmask 319488   ;;  %v900_v10 = vmov 0.0  }
  0x29   :  { %42 = vst [vmem:[%s1435_s2 + $0x10] sm:$0x1] %v900_v10  ;;  %44 = vst.msk [vmem:[%s1435_s2 + $0x18] sm:$0x1] %vm43_vm0, %v900_v10  ;;  %v64_v12 = vshrl.u32 %v63_v11, 7 }
  0x2a   :  { %47 = vst [vmem:[%s1435_s2 + $0x30] sm:$0x1] %v900_v10  ;;  %48 = vst.msk [vmem:[%s1435_s2 + $0x38] sm:$0x1] %vm43_vm0, %v900_v10 }
  0x2b   :  { %v962_v13 = vsub.s32 0, %v64_v12  ;;  %v78_v14 = vld [vmem:[#allocation4 + $0x1] ss:$8 sm:$0x3]  ;;  %v964_v16 = vsub.s32 1, %v64_v12 }
  0x2c   :  { %84 = vperm.xlu1 %810, %v50_v3   ;;  %59 = vperm.xlu0 %809, %v50_v3   ;;  %v51_v15 = vld [vmem:[#allocation4] ss:$8 sm:$0x3]  ;;  %v107_v23 = vld [vmem:[#allocation4 + $0x2] ss:$8 sm:$0x3] }
  0x2d   :  { %v91_v17 = vrot.slane %v78_v14, %v962_v13  ;;  %v66_v19 = vrot.slane %v51_v15, %v962_v13  ;;  %v95_v21 = vrot.slane %v78_v14, %v964_v16  ;;  %v70_v22 = vrot.slane %v51_v15, %v964_v16  ;;  %v136_v32 = vld [vmem:[#allocation4 + $0x3] ss:$8 sm:$0x3] }
  0x2e   :  { %v120_v33 = vrot.slane %v107_v23, %v962_v13  ;;  %v124_v34 = vrot.slane %v107_v23, %v964_v16  ;;  %v141_v37 = vrot.slane %v136_v32, %v962_v13  ;;  %v145_v41 = vrot.slane %v136_v32, %v964_v16 }
  0x2f   :  { %v903_v32 = vmov 2131351028  }
  0x30   :  { %812 = vset.pattern.permute.xlu1 %v894_v4  ;;  %811 = vset.pattern.permute.xlu0 %v894_v4 }
  0x31   :  { %113 = vperm.xlu1 %812, %v50_v3   ;;  %109 = vperm.xlu0 %811, %v49_v2  }
  0x35   :  { %813 = vset.pattern.permute.xlu1 %v895_v5  ;;  %814 = vset.pattern.permute.xlu0 %v895_v5 }
  0x36   :  { %571 = vperm.xlu1 %813, %v49_v2   ;;  %575 = vperm.xlu0 %814, %v50_v3  }
  0x3a   :  { %815 = vset.pattern.permute.xlu1 %v896_v6  ;;  %816 = vset.pattern.permute.xlu0 %v897_v7 }
  0x3b   :  { %608 = vperm.xlu1 %815, %v49_v2   ;;  %637 = vperm.xlu0 %816, %v49_v2  }
  0x3f   :  { %612 = vperm.xlu1 %815, %v50_v3   ;;  %819 = vset.pattern.permute.xlu0 %v898_v8 }
  0x40   :  { %670 = vperm.xlu0 %819, %v50_v3  }
  0x43   :  { %817 = vset.pattern.permute.xlu1 %v897_v7 }
  0x44   :  { %641 = vperm.xlu1 %817, %v50_v3   ;;  %821 = vset.pattern.permute.xlu0 %v899_v9 }
  0x48   :  { %818 = vset.pattern.permute.xlu1 %v898_v8 }
  0x49   :  { %666 = vperm.xlu1 %818, %v49_v2  }
  0x4d   :  { %820 = vset.pattern.permute.xlu1 %v899_v9 }
  0x4e   :  { %695 = vperm.xlu1 %820, %v49_v2  }
  0x52   :  { %699 = vperm.xlu1 %820, %v50_v3  }
  0xa7   :  { %v81_v18 = vpop.permute.xlu1 %80  ;;  %v55_v20 = vpop.permute.xlu0 %54 }
  0xa8   :  { %v98_v24 = vmul.f32 %v91_v17, %v81_v18  ;;  %v73_v25 = vmul.f32 %v66_v19, %v55_v20  ;;  %v99_v35 = vmul.f32 %v95_v21, %v81_v18  ;;  %v74_v36 = vmul.f32 %v70_v22, %v55_v20 }
  0xaa   :  { %v102_v38 = vadd.f32 %v98_v24, %v73_v25  ;;  %v103_v48 = vadd.f32 %v99_v35, %v74_v36  ;;  %v905_v36 = vmov 920167782  }
  0xab   :  { %v85_v26 = vpop.permute.xlu1 %84  ;;  %v60_v27 = vpop.permute.xlu0 %59 }
  0xac   :  { %v100_v28 = vmul.f32 %v91_v17, %v85_v26  ;;  %v101_v29 = vmul.f32 %v95_v21, %v85_v26  ;;  %v75_v30 = vmul.f32 %v66_v19, %v60_v27  ;;  %v76_v31 = vmul.f32 %v70_v22, %v60_v27 }
  0xad   :  { %v901_v27 = vmov 683565275  }
  0xae   :  { %v104_v39 = vadd.f32 %v100_v28, %v75_v30  ;;  %v105_v40 = vadd.f32 %v101_v29, %v76_v31  ;;  %v902_v29 = vmov 2475754826  }
  0xb0   :  { %v114_v42 = vpop.permute.xlu1 %113  ;;  %v110_v43 = vpop.permute.xlu0 %109 }
  0xb1   :  { %v129_v44 = vmul.f32 %v120_v33, %v114_v42  ;;  %v130_v45 = vmul.f32 %v124_v34, %v114_v42  ;;  %v127_v46 = vmul.f32 %v120_v33, %v110_v43  ;;  %v128_v47 = vmul.f32 %v124_v34, %v110_v43 }
  0xb2   :  { %v904_v34 = vmov 2102212464   ;;  %v906_v43 = vmov 1326507024  }
  0xb3   :  { %v133_v49 = vadd.f32 %v129_v44, %v104_v39  ;;  %v134_v50 = vadd.f32 %v130_v45, %v105_v40  ;;  %v131_v51 = vadd.f32 %v127_v46, %v102_v38  ;;  %v132_v52 = vadd.f32 %v128_v47, %v103_v48 }
  0xb5   :  { %v974_v53 = vadd.f32 %v141_v37, %v133_v49  ;;  %v976_v54 = vadd.f32 %v145_v41, %v134_v50  ;;  %v978_v55 = vadd.f32 %v141_v37, %v131_v51  ;;  %v984_v60 = vadd.f32 %v145_v41, %v132_v52 }
  0xb7   :  { %v360_v56 = vand.u32 2147483647, %v974_v53  ;;  %v363_v57 = vand.u32 2139095040, %v974_v53  ;;  %v464_v58 = vand.u32 2147483647, %v976_v54  ;;  %v467_v59 = vand.u32 2139095040, %v976_v54 }
  0xb8   :  { %v155_v61 = vand.u32 2139095040, %v978_v55  ;;  %v259_v7 = vand.u32 2139095040, %v984_v60  ;;  %v152_v25 = vand.u32 2147483647, %v978_v55 }
  0xb9   :  { %v364_v62 = vshrl.u32 %v363_v57, 23  ;;  %v367_v63 = vand.u32 8388607, %v360_v56  ;;  %v468_v0 = vshrl.u32 %v467_v59, 23  ;;  %v471_v1 = vand.u32 8388607, %v464_v58 }
  0xba   :  { %v156_v2 = vshrl.u32 %v155_v61, 23  ;;  %v994_v17 = vshrl.u32 %v259_v7, 23 }
  0xbb   :  { %v760_v3 = vadd.s32 4294967169, %v364_v62  ;;  %v368_v4 = vor.u32 8388608, %v367_v63  ;;  %v764_v5 = vadd.s32 4294967169, %v468_v0  ;;  %v472_v9 = vor.u32 8388608, %v471_v1 }
  0xbc   :  { %v752_v6 = vadd.s32 4294967169, %v156_v2 }
  0xbd   :  { %v370_v8 = vadd.s32 1, %v760_v3  ;;  %v474_v11 = vadd.s32 1, %v764_v5  ;;  %v992_v14 = vshll.u32 %v368_v4, 8  ;;  %v1000_v24 = vshll.u32 %v472_v9, 8 }
  0xbe   :  { %v162_v12 = vadd.s32 1, %v752_v6 }
  0xbf   :  { %vm371_vm1 = vcmp.gt.s32.totalorder %v370_v8, 0  ;;  %vm475_vm2 = vcmp.gt.s32.totalorder %v474_v11, 0 }
  0xc0   :  { %v372_v15 = vsel %vm371_vm1, %v370_v8, 0  ;;  %vm163_vm3 = vcmp.gt.s32.totalorder %v162_v12, 0  ;;  %v476_v20 = vsel %vm475_vm2, %v474_v11, 0 }
  0xc1   :  { %v373_v18 = vshrl.u32 %v372_v15, 5  ;;  %v374_v19 = vand.u32 31, %v372_v15  ;;  %v996_v21 = vsel %vm163_vm3, %v162_v12, 0  ;;  %v998_v22 = vshrl.u32 %v476_v20, 5 }
  0xc2   :  { %v478_v23 = vand.u32 31, %v476_v20  ;;  %v1006_v31 = vand.u32 31, %v996_v21 }
  0xc3   :  { %v375_v26 = vsub.s32 32, %v374_v19  ;;  %v377_v28 = vshll.u32 %v901_v27, %v374_v19  ;;  %v380_v30 = vshll.u32 %v902_v29, %v374_v19  ;;  %v383_v33 = vshll.u32 %v903_v32, %v374_v19 }
  0xc4   :  { %v386_v35 = vshll.u32 %v904_v34, %v374_v19  ;;  %v389_v37 = vshll.u32 %v905_v36, %v374_v19  ;;  %vm392_vm4 = vcmp.lt.s32.totalorder %v373_v18, 1  ;;  %vm393_vm5 = vcmp.lt.s32.totalorder %v373_v18, 2 }
  0xc5   :  { %v378_v38 = vshrl.u32 %v902_v29, %v375_v26  ;;  %v381_v39 = vshrl.u32 %v903_v32, %v375_v26  ;;  %v384_v40 = vshrl.u32 %v904_v34, %v375_v26  ;;  %v376_v41 = vshrl.u32 %v901_v27, %v375_v26 }
  0xc6   :  { %v387_v42 = vshrl.u32 %v905_v36, %v375_v26  ;;  %v390_v44 = vshrl.u32 %v906_v43, %v375_v26  ;;  %vm394_vm6 = vcmp.lt.s32.totalorder %v373_v18, 3  ;;  %v479_v48 = vsub.s32 32, %v478_v23 }
  0xc7   :  { %v379_v45 = vor.u32 %v378_v38, %v377_v28  ;;  %v382_v46 = vor.u32 %v381_v39, %v380_v30  ;;  %v385_v47 = vor.u32 %v384_v40, %v383_v33  ;;  %vm395_vm7 = vcmp.lt.s32.totalorder %v373_v18, 4 }
  0xc8   :  { %v388_v49 = vor.u32 %v387_v42, %v386_v35  ;;  %v391_v50 = vor.u32 %v390_v44, %v389_v37  ;;  %v481_v51 = vshll.u32 %v901_v27, %v478_v23  ;;  %v484_v1 = vshll.u32 %v902_v29, %v478_v23 }
  0xc9   :  { %v396_v52 = vsel %vm392_vm4, %v376_v41, %v379_v45  ;;  %v397_v57 = vsel %vm395_vm7, %v385_v47, 2102212464  ;;  %v400_v59 = vsel %vm392_vm4, %v379_v45, %v382_v46  ;;  %v404_v61 = vsel %vm392_vm4, %v382_v46, %v385_v47 }
  0xca   :  { %v398_v62 = vsel %vm394_vm6, %v382_v46, %v397_v57  ;;  %v401_v63 = vsel %vm395_vm7, %v388_v49, 920167782  ;;  %v405_v0 = vsel %vm395_vm7, %v391_v50, 1326507024  ;;  %v480_v4 = vshrl.u32 %v901_v27, %v479_v48 }
  0xcb   :  { %v402_v2 = vsel %vm394_vm6, %v385_v47, %v401_v63  ;;  %v406_v3 = vsel %vm394_vm6, %v388_v49, %v405_v0  ;;  %v482_v5 = vshrl.u32 %v902_v29, %v479_v48  ;;  %v399_v6 = vsel %vm393_vm5, %v396_v52, %v398_v62 }
  0xcc   :  { %v403_v7 = vsel %vm393_vm5, %v400_v59, %v402_v2  ;;  %v407_v8 = vsel %vm393_vm5, %v404_v61, %v406_v3  ;;  %v485_v9 = vshrl.u32 %v903_v32, %v479_v48  ;;  %v487_v28 = vshll.u32 %v903_v32, %v478_v23 }
  0xcd   :  { %v1032_v11 = vmul.u32.u64.low %v992_v14, %v407_v8  ;;  %v1033_v12 = vmul.u32.u64.high %v992_v14, %v407_v8, %v1032_v11  ;;  %v1036_v15 = vmul.u32.u64.low %v992_v14, %v403_v7  ;;  %v1037_v19 = vmul.u32.u64.high %v992_v14, %v403_v7, %v1036_v15 }
  0xce   :  { %v483_v20 = vor.u32 %v482_v5, %v481_v51  ;;  %v486_v26 = vor.u32 %v485_v9, %v484_v1  ;;  %v488_v30 = vshrl.u32 %v904_v34, %v479_v48  ;;  %v415_v33 = vmul.u32 %v992_v14, %v399_v6 }
  0xcf   :  { %v490_v18 = vshll.u32 %v904_v34, %v478_v23  ;;  %v491_v35 = vshrl.u32 %v905_v36, %v479_v48  ;;  %v494_v37 = vshrl.u32 %v906_v43, %v479_v48  ;;  %v493_v39 = vshll.u32 %v905_v36, %v478_v23 }
  0xd0   :  { %v489_v38 = vor.u32 %v488_v30, %v487_v28  ;;  %vm496_vm8 = vcmp.lt.s32.totalorder %v998_v22, 1  ;;  %vm497_vm9 = vcmp.lt.s32.totalorder %v998_v22, 2  ;;  %vm417_vm10 = vc.u32 %v1033_v12, %v1036_v15 }
  0xd1   :  { %v418_v40 = vadd.s32 1, %v1037_v19  ;;  %v492_v41 = vor.u32 %v491_v35, %v490_v18  ;;  %vm498_vm11 = vcmp.lt.s32.totalorder %v998_v22, 3  ;;  %v495_v14 = vor.u32 %v494_v37, %v493_v39 }
  0xd2   :  { %vm499_vm12 = vcmp.lt.s32.totalorder %v998_v22, 4  ;;  %v500_v42 = vsel %vm496_vm8, %v480_v4, %v483_v20  ;;  %v504_v44 = vsel %vm496_vm8, %v483_v20, %v486_v26  ;;  %v508_v47 = vsel %vm496_vm8, %v486_v26, %v489_v38 }
  0xd3   :  { %v419_v45 = vsel %vm417_vm10, %v418_v40, %v1037_v19  ;;  %v501_v46 = vsel %vm499_vm12, %v489_v38, 2102212464  ;;  %v505_v23 = vsel %vm499_vm12, %v492_v41, 920167782  ;;  %v509_v51 = vsel %vm499_vm12, %v495_v14, 1326507024 }
  0xd4   :  { %v420_v48 = vadd.s32 %v419_v45, %v415_v33  ;;  %v502_v49 = vsel %vm498_vm11, %v486_v26, %v501_v46  ;;  %v506_v50 = vsel %vm498_vm11, %v489_v38, %v505_v23  ;;  %v510_v57 = vsel %vm498_vm11, %v492_v41, %v509_v51 }
  0xd5   :  { %v507_v52 = vsel %vm497_vm9, %v504_v44, %v506_v50  ;;  %v167_v59 = vsub.s32 32, %v1006_v31  ;;  %v756_v61 = vadd.s32 4294967169, %v994_v17  ;;  %v511_v63 = vsel %vm497_vm9, %v508_v47, %v510_v57 }
  0xd6   :  { %v421_v62 = vadd.s32 536870912, %v420_v48  ;;  %v1060_v0 = vmul.u32.u64.low %v1000_v24, %v507_v52  ;;  %v1061_v1 = vmul.u32.u64.high %v1000_v24, %v507_v52, %v1060_v0  ;;  %v503_v2 = vsel %vm497_vm9, %v500_v42, %v502_v49 }
  0xd7   :  { %v1066_v3 = vmul.u32.u64.low %v1000_v24, %v511_v63  ;;  %v1067_v4 = vmul.u32.u64.high %v1000_v24, %v511_v63, %v1066_v3  ;;  %v1072_v6 = vshrl.u32 %v996_v21, 5  ;;  %v179_v17 = vshrl.u32 %v905_v36, %v167_v59 }
  0xd8   :  { %v1069_v5 = vshrl.u32 %v421_v62, 30  ;;  %v266_v7 = vadd.s32 1, %v756_v61  ;;  %v1077_v8 = vand.u32 8388607, %v152_v25  ;;  %v519_v22 = vmul.u32 %v1000_v24, %v503_v2 }
  0xd9   :  { %v522_v11 = vadd.s32 1, %v1061_v1  ;;  %v256_v19 = vand.u32 2147483647, %v984_v60  ;;  %vm521_vm13 = vc.u32 %v1067_v4, %v1060_v0  ;;  %v178_v21 = vshll.u32 %v904_v34, %v1006_v31 }
  0xda   :  { %v423_v9 = vshll.u32 %v1069_v5, 30  ;;  %v182_v20 = vshrl.u32 %v906_v43, %v167_v59  ;;  %vm267_vm14 = vcmp.gt.s32.totalorder %v266_v7, 0  ;;  %v416_v26 = vadd.s32 %v1036_v15, %v1033_v12 }
  0xdb   :  { %v523_v30 = vsel %vm521_vm13, %v522_v11, %v1061_v1  ;;  %v181_v24 = vshll.u32 %v905_v36, %v1006_v31  ;;  %v180_v18 = vor.u32 %v179_v17, %v178_v21  ;;  %vm187_vm15 = vcmp.lt.s32.totalorder %v1072_v6, 4 }
  0xdc   :  { %v1088_v28 = vsub.s32 %v420_v48, %v423_v9  ;;  %v524_v33 = vadd.s32 %v523_v30, %v519_v22  ;;  %v268_v35 = vsel %vm267_vm14, %v266_v7, 0  ;;  %v170_v39 = vshrl.u32 %v902_v29, %v167_v59 }
  0xdd   :  { %v1095_v38 = vand.u32 31, %v268_v35  ;;  %v173_v12 = vshrl.u32 %v903_v32, %v167_v59  ;;  %v183_v40 = vor.u32 %v182_v20, %v181_v24  ;;  %v175_v41 = vshll.u32 %v903_v32, %v1006_v31 }
  0xde   :  { %v426_v37 = vsub.s32 0, %v1088_v28  ;;  %v525_v15 = vadd.s32 536870912, %v524_v33  ;;  %v176_v14 = vshrl.u32 %v904_v34, %v167_v59  ;;  %v169_v45 = vshll.u32 %v901_v27, %v1006_v31 }
  0xdf   :  { %v1104_v44 = vsub.s32 32, %v1095_v38  ;;  %v172_v46 = vshll.u32 %v902_v29, %v1006_v31  ;;  %v160_v47 = vor.u32 8388608, %v1077_v8  ;;  %v168_v48 = vshrl.u32 %v901_v27, %v167_v59 }
  0xe0   :  { %v761_v42 = vmin.u32 %v426_v37, %v1088_v28  ;;  %v1110_v23 = vshrl.u32 %v525_v15, 30  ;;  %v177_v49 = vor.u32 %v176_v14, %v175_v41  ;;  %v1115_v51 = vadd.s32 %v1060_v0, %v1067_v4 }
  0xe1   :  { %v171_v52 = vor.u32 %v170_v39, %v169_v45  ;;  %v174_v57 = vor.u32 %v173_v12, %v172_v46  ;;  %v193_v62 = vsel %vm187_vm15, %v180_v18, 920167782  ;;  %v197_v31 = vsel %vm187_vm15, %v183_v40, 1326507024 }
  0xe2   :  { %v428_v50 = vclz %v761_v42  ;;  %v527_v61 = vshll.u32 %v1110_v23, 30  ;;  %v1122_v63 = vshrl.u32 %v268_v35, 5  ;;  %v282_v59 = vshll.u32 %v904_v34, %v1095_v38 }
  0xe3   :  { %v283_v0 = vshrl.u32 %v905_v36, %v1104_v44  ;;  %v1130_v2 = vshrl.u32 %v906_v43, %v1104_v44  ;;  %vm184_vm0 = vcmp.lt.s32.totalorder %v1072_v6, 1  ;;  %vm186_vm1 = vcmp.lt.s32.totalorder %v1072_v6, 3 }
  0xe4   :  { %v762_v1 = vadd.s32 4294967294, %v428_v50  ;;  %v1132_v3 = vsub.s32 %v524_v33, %v527_v61  ;;  %v189_v4 = vsel %vm187_vm15, %v177_v49, 2102212464  ;;  %vm185_vm3 = vcmp.lt.s32.totalorder %v1072_v6, 2 }
  0xe5   :  { %v192_v17 = vsel %vm184_vm0, %v171_v52, %v174_v57  ;;  %v194_v7 = vsel %vm186_vm1, %v177_v49, %v193_v62  ;;  %v188_v22 = vsel %vm184_vm0, %v168_v48, %v171_v52  ;;  %v196_v43 = vsel %vm184_vm0, %v174_v57, %v177_v49 }
  0xe6   :  { %vm763_vm2 = vcmp.lt.s32.totalorder %v762_v1, 0  ;;  %v530_v9 = vsub.s32 0, %v1132_v3  ;;  %v190_v20 = vsel %vm186_vm1, %v174_v57, %v189_v4  ;;  %v198_v30 = vsel %vm186_vm1, %v180_v18, %v197_v31 }
  0xe7   :  { %v431_v8 = vsel %vm763_vm2, 0, %v762_v1  ;;  %v195_v33 = vsel %vm185_vm3, %v192_v17, %v194_v7  ;;  %v199_v35 = vsel %vm185_vm3, %v196_v43, %v198_v30  ;;  %v200_v37 = vshll.u32 %v160_v47, 8 }
  0xe8   :  { %v432_v11 = vsub.s32 32, %v431_v8  ;;  %v436_v21 = vsub.s32 4294967266, %v431_v8  ;;  %v765_v24 = vmin.u32 %v530_v9, %v1132_v3  ;;  %v433_v39 = vshll.u32 %v1088_v28, %v431_v8 }
  0xe9   :  { %v285_v40 = vshll.u32 %v905_v36, %v1095_v38  ;;  %v191_v18 = vsel %vm185_vm3, %v188_v22, %v190_v20  ;;  %v1150_v14 = vmul.u32.u64.low %v200_v37, %v199_v35  ;;  %v1151_v42 = vmul.u32.u64.high %v200_v37, %v199_v35, %v1150_v14 }
  0xea   :  { %v434_v12 = vshrl.u32 %v416_v26, %v432_v11  ;;  %v437_v15 = vadd.s32 127, %v436_v21  ;;  %v532_v41 = vclz %v765_v24  ;;  %v284_v28 = vor.u32 %v283_v0, %v282_v59 }
  0xeb   :  { %v1153_v48 = vmul.u32.u64.low %v200_v37, %v195_v33  ;;  %v1154_v49 = vmul.u32.u64.high %v200_v37, %v195_v33, %v1153_v48  ;;  %v287_v26 = vor.u32 %v1130_v2, %v285_v40  ;;  %vm291_vm4 = vcmp.lt.s32.totalorder %v1122_v63, 4 }
  0xec   :  { %v435_v45 = vor.u32 %v434_v12, %v433_v39  ;;  %v438_v46 = vshll.u32 %v437_v15, 23  ;;  %v766_v47 = vadd.s32 4294967294, %v532_v41  ;;  %v207_v50 = vmul.u32 %v200_v37, %v191_v18 }
  0xed   :  { %v263_v6 = vand.u32 8388607, %v256_v19  ;;  %v277_v52 = vshrl.u32 %v903_v32, %v1104_v44  ;;  %vm209_vm6 = vc.u32 %v1151_v42, %v1153_v48  ;;  %v274_v57 = vshrl.u32 %v902_v29, %v1104_v44 }
  0xee   :  { %v439_v36 = vor.u32 4788187, %v438_v46  ;;  %vm767_vm5 = vcmp.lt.s32.totalorder %v766_v47, 0  ;;  %v276_v61 = vshll.u32 %v902_v29, %v1095_v38  ;;  %v442_v31 = vcvt.s32.f32 %v435_v45  ;;  %v1202_v45 = vpop.permute.xlu1 %571 }
  0xef   :  { %v535_v1 = vsel %vm767_vm5, 0, %v766_v47  ;;  %v210_v59 = vadd.s32 1, %v1154_v49  ;;  %v273_v4 = vshll.u32 %v901_v27, %v1095_v38  ;;  %v279_v9 = vshll.u32 %v903_v32, %v1095_v38 }
  0xf0   :  { %v440_v62 = vand.u32 2147483647, %v439_v36  ;;  %v536_v0 = vsub.s32 32, %v535_v1  ;;  %v540_v2 = vsub.s32 4294967266, %v535_v1  ;;  %v278_v17 = vor.u32 %v277_v52, %v276_v61 }
  0xf1   :  { %v211_v8 = vsel %vm209_vm6, %v210_v59, %v1154_v49  ;;  %v280_v29 = vshrl.u32 %v904_v34, %v1104_v44  ;;  %v537_v22 = vshll.u32 %v1132_v3, %v535_v1  ;;  %v297_v30 = vsel %vm291_vm4, %v284_v28, 920167782 }
  0xf2   :  { %v443_v7 = vmul.f32 %v442_v31, %v440_v62  ;;  %v538_v43 = vshrl.u32 %v1115_v51, %v536_v0  ;;  %v541_v11 = vadd.s32 127, %v540_v2  ;;  %v212_v21 = vadd.s32 %v211_v8, %v207_v50 }
  0xf3   :  { %v275_v24 = vor.u32 %v274_v57, %v273_v4  ;;  %v281_v33 = vor.u32 %v280_v29, %v279_v9  ;;  %v301_v32 = vsel %vm291_vm4, %v287_v26, 1326507024  ;;  %vm1185_vm7 = vcmp.le.f32.partialorder %v360_v56, 0.7853982  ;;  %v1239_v4 = vpop.permute.xlu1 %608 }
  0xf4   :  { %v444_v20 = vxor.u32 2147483648, %v443_v7  ;;  %v539_v35 = vor.u32 %v538_v43, %v537_v22  ;;  %v542_v37 = vshll.u32 %v541_v11, 23  ;;  %v213_v38 = vadd.s32 536870912, %v212_v21  ;;  %v606_v22 = vld [vmem:[#allocation4 + $0x5] ss:$8 sm:$0x3] }
  0xf5   :  { %vm362_vm8 = vcmp.lt.s32.totalorder %v974_v53, 0  ;;  %v264_v51 = vor.u32 8388608, %v263_v6  ;;  %vm288_vm9 = vcmp.lt.s32.totalorder %v1122_v63, 1  ;;  %vm290_vm10 = vcmp.lt.s32.totalorder %v1122_v63, 3 }
  0xf6   :  { %v543_v3 = vor.u32 4788187, %v542_v37  ;;  %v214_v39 = vshrl.u32 %v213_v38, 30  ;;  %v300_v12 = vsel %vm288_vm9, %v278_v17, %v281_v33  ;;  %v445_v15 = vsel %vm362_vm8, %v444_v20, %v443_v7 }
  0xf7   :  { %v296_v56 = vsel %vm288_vm9, %v275_v24, %v278_v17  ;;  %v298_v40 = vsel %vm290_vm10, %v281_v33, %v297_v30  ;;  %v302_v41 = vsel %vm290_vm10, %v284_v28, %v301_v32  ;;  %v546_v14 = vcvt.s32.f32 %v539_v35  ;;  %v613_v32 = vpop.permute.xlu1 %612 }
  0xf8   :  { %v544_v18 = vand.u32 2147483647, %v543_v3  ;;  %v215_v46 = vshll.u32 %v214_v39, 30  ;;  %vm289_vm11 = vcmp.lt.s32.totalorder %v1122_v63, 2  ;;  %v272_v49 = vshrl.u32 %v901_v27, %v1104_v44 }
  0xf9   :  { %v293_v47 = vsel %vm291_vm4, %v281_v33, 2102212464  ;;  %v303_v26 = vsel %vm289_vm11, %v300_v12, %v302_v41  ;;  %v304_v36 = vshll.u32 %v264_v51, 8  ;;  %v448_v28 = vsel %vm1185_vm7, %v974_v53, %v445_v15 }
  0xfa   :  { %v547_v50 = vmul.f32 %v546_v14, %v544_v18  ;;  %v1214_v6 = vsub.s32 %v212_v21, %v215_v46  ;;  %v299_v52 = vsel %vm289_vm11, %v296_v56, %v298_v40  ;;  %v292_v62 = vsel %vm288_vm9, %v272_v49, %v275_v24 }
  0xfb   :  { %v1218_v57 = vmul.u32.u64.low %v304_v36, %v303_v26  ;;  %v1219_v61 = vmul.u32.u64.high %v304_v36, %v303_v26, %v1218_v57  ;;  %v294_v31 = vsel %vm290_vm10, %v278_v17, %v293_v47  ;;  %822 = vsinq.f32 %v448_v28  ;;  %v1286_v47 = vpop.permute.xlu1 %641 }
  0xfc   :  { %v548_v27 = vxor.u32 2147483648, %v547_v50  ;;  %v218_v44 = vsub.s32 0, %v1214_v6  ;;  %vm466_vm12 = vcmp.lt.s32.totalorder %v976_v54, 0  ;;  %824 = vcosq.f32 %v448_v28 }
  0xfd   :  { %v1227_v1 = vmul.u32.u64.low %v304_v36, %v299_v52  ;;  %v1228_v59 = vmul.u32.u64.high %v304_v36, %v299_v52, %v1227_v1  ;;  %vm1233_vm13 = vcmp.le.f32.partialorder %v464_v58, 0.7853982  ;;  %v238_v8 = vsub.s32 4, %v214_v39  ;;  %v569_v58 = vld [vmem:[#allocation4 + $0x4] ss:$8 sm:$0x3] }
  0xfe   :  { %v549_v2 = vsel %vm466_vm12, %v548_v27, %v547_v50  ;;  %v753_v17 = vmin.u32 %v218_v44, %v1214_v6  ;;  %v295_v9 = vsel %vm289_vm11, %v292_v62, %v294_v31  ;;  %vm154_vm15 = vcmp.lt.s32.totalorder %v978_v55, 0  ;;  %v635_v50 = vld [vmem:[#allocation4 + $0x6] ss:$8 sm:$0x3] }
  0xff   :  { %v552_v7 = vsel %vm1233_vm13, %v976_v54, %v549_v2  ;;  %vm313_vm14 = vc.u32 %v1219_v61, %v1227_v1  ;;  %v314_v43 = vadd.s32 1, %v1228_v59  ;;  %v311_v21 = vmul.u32 %v304_v36, %v295_v9 }
 0x100   :  { %826 = vcosq.f32 %v552_v7  ;;  %v220_v29 = vclz %v753_v17  ;;  %v1252_v20 = vrot.slane %v569_v58, %v962_v13  ;;  %v239_v63 = vsel %vm154_vm15, %v238_v8, %v214_v39  ;;  %v1302_v17 = vpop.permute.xlu0 %575 }
 0x101   :  { %828 = vsinq.f32 %v552_v7  ;;  %v315_v30 = vsel %vm313_vm14, %v314_v43, %v1228_v59  ;;  %v446_v24 = vsub.s32 4, %v1069_v5  ;;  %v1259_v33 = vrot.slane %v606_v22, %v962_v13 }
 0x102   :  { %v754_v11 = vadd.s32 4294967294, %v220_v29  ;;  %vm1263_vm0 = vcmp.le.f32.partialorder %v152_v25, 0.7853982  ;;  %v316_v37 = vadd.s32 %v315_v30, %v311_v21  ;;  %v208_v38 = vadd.s32 %v1153_v48, %v1151_v42  ;;  %v1315_v21 = vpop.permute.xlu1 %666 }
 0x103   :  { %v447_v3 = vsel %vm362_vm8, %v446_v24, %v1069_v5  ;;  %v550_v39 = vsub.s32 4, %v1110_v23  ;;  %v241_v25 = vsel %vm1263_vm0, 0, %v239_v63  ;;  %v1276_v41 = vrot.slane %v606_v22, %v964_v16 }
 0x104   :  { %vm755_vm1 = vcmp.lt.s32.totalorder %v754_v11, 0  ;;  %v317_v56 = vadd.s32 536870912, %v316_v37  ;;  %v449_v42 = vsel %vm1185_vm7, 0, %v447_v3  ;;  %v1289_v36 = vrot.slane %v569_v58, %v964_v16  ;;  %v1328_v3 = vpop.permute.xlu0 %637 }
 0x105   :  { %v223_v51 = vsel %vm755_vm1, 0, %v754_v11  ;;  %v823_v40 = vpop.eup %822  ;;  %v551_v5 = vsel %vm466_vm12, %v550_v39, %v1110_v23  ;;  %v453_v26 = vadd.s32 3, %v449_v42  ;;  %v1291_v28 = vadd.s32 3, %v241_v25 }
 0x106   :  { %v224_v12 = vsub.s32 32, %v223_v51  ;;  %v228_v15 = vsub.s32 4294967266, %v223_v51  ;;  %v225_v18 = vshll.u32 %v1214_v6, %v223_v51  ;;  %v825_v48 = vpop.eup %824  ;;  %v1284_v49 = vshrl.u32 %v317_v56, 30 }
 0x107   :  { %v1294_v34 = vmul.f32 %v1259_v33, %v613_v32  ;;  %v553_v23 = vsel %vm1233_vm13, 0, %v551_v5  ;;  %v457_v44 = vxor.u32 2147483648, %v823_v40  ;;  %v1300_v62 = vmul.f32 %v1276_v41, %v613_v32 }
 0x108   :  { %v226_v14 = vshrl.u32 %v208_v38, %v224_v12  ;;  %v229_v46 = vadd.s32 127, %v228_v15  ;;  %v319_v27 = vshll.u32 %v1284_v49, 30  ;;  %v454_v31 = vand.u32 3, %v453_v26 }
 0x109   :  { %v460_v59 = vxor.u32 2147483648, %v825_v48  ;;  %v557_v2 = vadd.s32 3, %v553_v23  ;;  %v1306_v0 = vadd.s32 %v1227_v1, %v1219_v61  ;;  %v1311_v58 = vrot.slane %v635_v50, %v962_v13 }
 0x10a   :  { %v827_v6 = vpop.eup %826  ;;  %v227_v52 = vor.u32 %v226_v14, %v225_v18  ;;  %v230_v57 = vshll.u32 %v229_v46, 23  ;;  %v1308_v9 = vsub.s32 %v316_v37, %v319_v27  ;;  %vm452_vm2 = vweird.f32 %v974_v53  ;;  %v664_v18 = vld [vmem:[#allocation4 + $0x7] ss:$8 sm:$0x3] }
 0x10b   :  { %v829_v7 = vpop.eup %828  ;;  %vm456_vm3 = vcmp.eq.s32.totalorder %v454_v31, 0  ;;  %v564_v22 = vxor.u32 2147483648, %v827_v6  ;;  %vm459_vm4 = vcmp.eq.s32.totalorder %v454_v31, 2  ;;  %vm455_vm5 = vcmp.lt.s32.totalorder %v454_v31, 2 }
 0x10c   :  { %v231_v8 = vor.u32 4788187, %v230_v57  ;;  %v234_v29 = vcvt.s32.f32 %v227_v52  ;;  %v322_v11 = vsub.s32 0, %v1308_v9  ;;  %v458_v63 = vsel %vm456_vm3, %v825_v48, %v457_v44  ;;  %v1334_v48 = vpop.permute.xlu1 %695  ;;  %v671_v57 = vpop.permute.xlu0 %670 }
 0x10d   :  { %v461_v61 = vsel %vm459_vm4, %v460_v59, %v823_v40  ;;  %v558_v1 = vand.u32 3, %v557_v2  ;;  %v561_v30 = vxor.u32 2147483648, %v829_v7  ;;  %vm591_vm6 = vcmp.eq.f32.partialorder %v1302_v17, %v1252_v20  ;;  %v722_v2 = vld [vmem:[#allocation4 + $0x11] ss:$8 sm:$0x3] }
 0x10e   :  { %v232_v43 = vand.u32 2147483647, %v231_v8  ;;  %v757_v37 = vmin.u32 %v322_v11, %v1308_v9  ;;  %v462_v32 = vsel %vm455_vm5, %v458_v63, %v461_v61  ;;  %v1321_v38 = vrot.slane %v635_v50, %v964_v16  ;;  %v693_v50 = vld [vmem:[#allocation4 + $0x10] ss:$8 sm:$0x3] }
 0x10f   :  { %v463_v51 = vsel %vm452_vm2, nan, %v462_v32  ;;  %vm556_vm7 = vweird.f32 %v976_v54  ;;  %vm592_vm8 = vcmp.eq.f32.partialorder %v1302_v17, %v1289_v36  ;;  %vm560_vm9 = vcmp.eq.s32.totalorder %v558_v1, 0 }
 0x110   :  { %v235_v24 = vmul.f32 %v234_v29, %v232_v43  ;;  %v324_v12 = vclz %v757_v37  ;;  %vm563_vm10 = vcmp.eq.s32.totalorder %v558_v1, 2  ;;  %vm559_vm11 = vcmp.lt.s32.totalorder %v558_v1, 2  ;;  %v700_v11 = vpop.permute.xlu1 %699 }
 0x111   :  { %v562_v15 = vsel %vm560_vm9, %v827_v6, %v561_v30  ;;  %v565_v25 = vsel %vm563_vm10, %v564_v22, %v829_v7  ;;  %v770_v56 = vsel %vm591_vm6, 1.0, %v900_v10  ;;  %v771_v5 = vsel %vm592_vm8, 1.0, %v900_v10 }
 0x112   :  { %v236_v39 = vxor.u32 2147483648, %v235_v24  ;;  %v758_v40 = vadd.s32 4294967294, %v324_v12  ;;  %v566_v42 = vsel %vm559_vm11, %v562_v15, %v565_v25  ;;  %v603_v26 = vadd.f32 %v770_v56, %v463_v51 }
 0x113   :  { %v567_v46 = vsel %vm556_vm7, nan, %v566_v42  ;;  %vm40_vm12 = vcmask 326656   ;;  %v657_v23 = vmul.f32 %v1311_v58, %v1286_v47  ;;  %v658_v35 = vmul.f32 %v1321_v38, %v1286_v47 }
 0x114   :  { %v237_v53 = vsel %vm154_vm15, %v236_v39, %v235_v24  ;;  %vm759_vm13 = vcmp.lt.s32.totalorder %v758_v40, 0  ;;  %v604_v6 = vadd.f32 %v771_v5, %v567_v46  ;;  %41 = vst.msk [vmem:[%s1435_s2 + $0x8] sm:$0xff] %vm40_vm12, %v900_v10  ;;  %46 = vst.msk [vmem:[%s1435_s2 + $0x28] sm:$0xff] %vm40_vm12, %v900_v10  ;;  %v1356_v52 = vrot.slane %v664_v18, %v962_v13 }
 0x115   :  { %v240_v14 = vsel %vm1263_vm0, %v978_v55, %v237_v53  ;;  %v327_v54 = vsel %vm759_vm13, 0, %v758_v40  ;;  %v1359_v31 = vrot.slane %v664_v18, %v964_v16  ;;  %v1362_v59 = vrot.slane %v693_v50, %v962_v13 }
 0x116   :  { %830 = vcosq.f32 %v240_v14  ;;  %v328_v27 = vsub.s32 32, %v327_v54  ;;  %v332_v44 = vsub.s32 4294967266, %v327_v54  ;;  %v329_v7 = vshll.u32 %v1308_v9, %v327_v54 }
 0x117   :  { %832 = vsinq.f32 %v240_v14  ;;  %v1366_v8 = vrot.slane %v693_v50, %v964_v16  ;;  %v632_v47 = vadd.f32 %v1294_v34, %v603_v26  ;;  %v633_v29 = vadd.f32 %v1300_v62, %v604_v6 }
 0x118   :  { %v330_v22 = vshrl.u32 %v1306_v0, %v328_v27  ;;  %v333_v43 = vadd.s32 127, %v332_v44  ;;  %v686_v63 = vmul.f32 %v1356_v52, %v671_v57  ;;  %v687_v61 = vmul.f32 %v1359_v31, %v671_v57 }
 0x119   :  { %v661_v1 = vadd.f32 %v657_v23, %v632_v47  ;;  %v662_v30 = vadd.f32 %v658_v35, %v633_v29  ;;  %v727_v24 = vrot.slane %v722_v2, %v962_v13  ;;  %v1375_v9 = vrot.slane %v722_v2, %v964_v16 }
 0x11a   :  { %v331_v37 = vor.u32 %v330_v22, %v329_v7  ;;  %v334_v32 = vshll.u32 %v333_v43, 23  ;;  %v715_v34 = vmul.f32 %v1362_v59, %v700_v11  ;;  %v716_v62 = vmul.f32 %v1366_v8, %v700_v11 }
 0x11b   :  { %v690_v0 = vadd.f32 %v686_v63, %v661_v1  ;;  %v691_v51 = vadd.f32 %v687_v61, %v662_v30  ;;  %v246_v39 = vand.u32 3, %v1291_v28  ;;  %v736_v15 = vmul.f32 %v727_v24, %v1302_v17 }
 0x11c   :  { %v335_v12 = vor.u32 4788187, %v334_v32  ;;  %v737_v25 = vmul.f32 %v1375_v9, %v1302_v17  ;;  %v338_v40 = vcvt.s32.f32 %v331_v37  ;;  %vm589_vm14 = vcmp.eq.f32.partialorder %v1202_v45, %v1252_v20 }
 0x11d   :  { %v719_v13 = vadd.f32 %v715_v34, %v690_v0  ;;  %v720_v56 = vadd.f32 %v716_v62, %v691_v51  ;;  %vm251_vm15 = vcmp.eq.s32.totalorder %v246_v39, 2  ;;  %v342_v26 = vsub.s32 4, %v1284_v49 }
 0x11e   :  { %v336_v53 = vand.u32 2147483647, %v335_v12  ;;  %vm248_vm0 = vcmp.eq.s32.totalorder %v246_v39, 0  ;;  %vm247_vm1 = vcmp.lt.s32.totalorder %v246_v39, 2  ;;  %vm258_vm2 = vcmp.lt.s32.totalorder %v984_v60, 0 }
 0x11f   :  { %v740_v5 = vadd.f32 %v736_v15, %v719_v13  ;;  %v741_v14 = vadd.f32 %v737_v25, %v720_v56  ;;  %v768_v6 = vsel %vm589_vm14, 1.0, %v900_v10  ;;  %vm244_vm3 = vweird.f32 %v978_v55 }
 0x120   :  { %v831_v16 = vpop.eup %830  ;;  %v339_v28 = vmul.f32 %v338_v40, %v336_v53  ;;  %vm257_vm4 = vcmp.le.f32.partialorder %v256_v19, 0.7853982  ;;  %v343_v27 = vsel %vm258_vm2, %v342_v26, %v1284_v49  ;;  %v626_v7 = vmul.f32 %v1259_v33, %v1239_v4 }
 0x121   :  { %v833_v18 = vpop.eup %832  ;;  %v252_v42 = vxor.u32 2147483648, %v831_v16  ;;  %744 = vst [vmem:[%s1435_s2 + $0x20] sm:$0xff] %v740_v5  ;;  %745 = vst.msk [vmem:[%s1435_s2 + $0x28] sm:$0xff] %vm40_vm12, %v741_v14  ;;  %v345_v47 = vsel %vm257_vm4, 0, %v343_v27  ;;  %v655_v55 = vmul.f32 %v1311_v58, %v1328_v3  ;;  %v684_v29 = vmul.f32 %v1356_v52, %v1315_v21 }
 0x122   :  { %v249_v46 = vxor.u32 2147483648, %v833_v18  ;;  %v340_v23 = vxor.u32 2147483648, %v339_v28  ;;  %v349_v22 = vadd.s32 3, %v345_v47  ;;  %v713_v49 = vmul.f32 %v1362_v59, %v1334_v48 }
 0x123   :  { %v253_v50 = vsel %vm251_vm15, %v252_v42, %v833_v18  ;;  %v734_v11 = vmul.f32 %v727_v24, %v1202_v45  ;;  %vm590_vm6 = vcmp.eq.f32.partialorder %v1202_v45, %v1289_v36  ;;  %vm348_vm9 = vweird.f32 %v984_v60 }
 0x124   :  { %v250_v17 = vsel %vm248_vm0, %v831_v16, %v249_v46  ;;  %v341_v57 = vsel %vm258_vm2, %v340_v23, %v339_v28  ;;  %v350_v33 = vand.u32 3, %v349_v22  ;;  %v769_v32 = vsel %vm590_vm6, 1.0, %v900_v10 }
 0x125   :  { %v254_v54 = vsel %vm247_vm1, %v250_v17, %v253_v50  ;;  %v344_v44 = vsel %vm257_vm4, %v984_v60, %v341_v57  ;;  %v627_v0 = vmul.f32 %v1276_v41, %v1239_v4  ;;  %v656_v39 = vmul.f32 %v1321_v38, %v1328_v3 }
 0x126   :  { %v255_v35 = vsel %vm244_vm3, nan, %v254_v54  ;;  %834 = vcosq.f32 %v344_v44  ;;  %vm355_vm5 = vcmp.eq.s32.totalorder %v350_v33, 2  ;;  %vm352_vm7 = vcmp.eq.s32.totalorder %v350_v33, 0 }
 0x127   :  { %v601_v2 = vadd.f32 %v768_v6, %v255_v35  ;;  %836 = vsinq.f32 %v344_v44  ;;  %vm351_vm8 = vcmp.lt.s32.totalorder %v350_v33, 2  ;;  %v685_v36 = vmul.f32 %v1359_v31, %v1315_v21 }
 0x128   :  { %v714_v15 = vmul.f32 %v1366_v8, %v1334_v48  ;;  %v735_v10 = vmul.f32 %v1375_v9, %v1202_v45 }
 0x129   :  { %v630_v20 = vadd.f32 %v626_v7, %v601_v2 }
 0x12b   :  { %v659_v19 = vadd.f32 %v655_v55, %v630_v20 }
 0x12d   :  { %v688_v43 = vadd.f32 %v684_v29, %v659_v19 }
 0x12f   :  { %v717_v63 = vadd.f32 %v713_v49, %v688_v43 }
 0x130   :  { %v835_v1 = vpop.eup %834 }
 0x131   :  { %v738_v61 = vadd.f32 %v734_v11, %v717_v63  ;;  %v837_v30 = vpop.eup %836  ;;  %v356_v37 = vxor.u32 2147483648, %v835_v1 }
 0x132   :  { %v353_v58 = vxor.u32 2147483648, %v837_v30 }
 0x133   :  { %742 = vst [vmem:[%s1435_s2] sm:$0xff] %v738_v61  ;;  %v357_v52 = vsel %vm355_vm5, %v356_v37, %v837_v30 }
 0x134   :  { %v354_v59 = vsel %vm352_vm7, %v835_v1, %v353_v58 }
 0x135   :  { %v358_v24 = vsel %vm351_vm8, %v354_v59, %v357_v52 }
 0x136   :  { %v359_v34 = vsel %vm348_vm9, nan, %v358_v24 }
 0x137   :  { %v602_v62 = vadd.f32 %v769_v32, %v359_v34 }
 0x139   :  { %v631_v51 = vadd.f32 %v627_v0, %v602_v62 }
 0x13b   :  { %v660_v12 = vadd.f32 %v656_v39, %v631_v51 }
 0x13d   :  { %v689_v60 = vadd.f32 %v685_v36, %v660_v12 }
 0x13f   :  { %v718_v25 = vadd.f32 %v714_v15, %v689_v60 }
 0x141   :  { %v739_v13 = vadd.f32 %v735_v10, %v718_v25 }
 0x143   :  { %743 = vst.msk [vmem:[%s1435_s2 + $0x8] sm:$0xff] %vm40_vm12, %v739_v13 }
 0x144   :  { %750 = vsyncpa [#allocation3], 1 }
 0x145   :  { %751 = vsyncpa [#allocation5], 1 }

</bundles_post_ra>
